<compile_context>
chip_gen: v6e
topology: v6e:2x2x1
jax: 0.10.0
libtpu: 0.0.40
codegen_flags: <defaults>
</compile_context>

<pallas_src>
import numpy as np

import jax
import jax.numpy as jnp
from jax.experimental import pallas as pl
from jax.experimental.pallas import tpu as pltpu


TAP_BAND = 256      # per-pool-tap column band: 200 real features zero-padded to 256 lanes
FC1_PAD = 512       # fc1 width 500 -> 512
FC2_PAD = 128       # fc2 width 14 -> 128 (lane-dense HBM store)


def _round_up(x, m):
    return ((x + m - 1) // m) * m


# ------------------------------ fused Pallas kernel -----------------------------------

def _fused_minicnn_kernel(x_ref, wcat_ref, bias_ref, w1_ref, w2_ref, o_ref):
    """Entire MiniCNN forward for one batch block; every intermediate stays on-chip.

    x_ref   : (bb, 200)        NCHW-flattened input block
    wcat_ref: (200, 4*256)     linearized conv+pool operator; tap t lives in columns
                               [t*256, t*256+200), rest zero
    bias_ref: (1, 256+512+128) concat of [conv bias | fc1 bias | fc2 bias], zero-padded
    w1_ref  : (256, 512)       fc1 weight, zero-padded from (200, 500)
    w2_ref  : (512, 128)       fc2 weight, zero-padded from (500, 14)
    o_ref   : (bb, 128)        padded logits (first 14 columns are real)
    """
    band = w1_ref.shape[0]             # 256
    fc1 = w1_ref.shape[1]              # 512
    ntap = wcat_ref.shape[1] // band   # 4

    x = x_ref[...]                                                       # (bb, 200)

    # Conv3x3(pad=1) + ReLU + MaxPool2x2, linearized into ONE lane-aligned MXU matmul;
    # the pool max is an elementwise max over static 256-column slices (ReLU after max
    # == max of ReLUs; the conv bias is tap-invariant so it is added once after the max).
    t = jnp.dot(x, wcat_ref[...], preferred_element_type=jnp.float32)    # (bb, 1024)
    parts = [t[:, i * band:(i + 1) * band] for i in range(ntap)]
    while len(parts) > 1:                                                # balanced VPU max tree
        nxt = [jnp.maximum(parts[i], parts[i + 1]) for i in range(0, len(parts) - 1, 2)]
        if len(parts) % 2:
            nxt.append(parts[-1])
        parts = nxt
    feat = jnp.maximum(parts[0] + bias_ref[:, :band], 0.0)               # (bb, 256)

    # fc1 -> fc2 (no nonlinearity in between, per the PyTorch module).
    h = (jnp.dot(feat, w1_ref[...], preferred_element_type=jnp.float32)
         + bias_ref[:, band:band + fc1])                                 # (bb, 512)
    y = (jnp.dot(h, w2_ref[...], preferred_element_type=jnp.float32)
         + bias_ref[:, band + fc1:])                                     # (bb, 128)
    o_ref[...] = y.astype(o_ref.dtype)


# ------------------------------ parameter preprocessing --------------------------------

def build_fused_feature_operator(conv_w, conv_b, *, H=10, W=10, band=TAP_BAND):
    """Linearize Conv2d(KxK, pad=(K-1)//2, stride=1) + MaxPool2d(2) into one matrix.

    conv_w: (K, K, Cin, Cout)   conv_b: (1, Cout)

    Returns
      wcat: (Cin*H*W, 4*band) float32.  Rows index the NCHW-flattened input (c, h, w);
            tap (pi, pj) occupies columns [tap*band, tap*band + Cout*Ho*Wo), laid out in
            NCHW pooled-flatten order (c, oh, ow) — exactly the order torch's flatten
            feeds into fc1 — the remaining columns of each band are zero.
      cb  : (1, band) float32 conv bias in the same column layout (zero-padded).
    """
    K = conv_w.shape[0]
    Cin, Cout = conv_w.shape[2], conv_w.shape[3]
    Ho, Wo = H // 2, W // 2
    pad = (K - 1) // 2
    nfeat = Cout * Ho * Wo
    assert nfeat <= band, (nfeat, band)

    wnp = np.asarray(conv_w, dtype=np.float32)
    wcat = np.zeros((Cin * H * W, 4 * band), dtype=np.float32)
    for pi in range(2):
        for pj in range(2):
            base = (pi * 2 + pj) * band
            for kh in range(K):
                for kw in range(K):
                    for oh in range(Ho):
                        ih = 2 * oh + pi + kh - pad
                        if ih < 0 or ih >= H:
                            continue
                        for ow in range(Wo):
                            iw = 2 * ow + pj + kw - pad
                            if iw < 0 or iw >= W:
                                continue
                            for ci in range(Cin):
                                row = ci * H * W + ih * W + iw
                                for co in range(Cout):
                                    col = base + co * Ho * Wo + oh * Wo + ow
                                    wcat[row, col] += wnp[kh, kw, ci, co]

    bnp = np.asarray(conv_b, dtype=np.float32).reshape(-1)
    cb = np.zeros((1, band), dtype=np.float32)
    cb[0, :nfeat] = np.repeat(bnp, Ho * Wo)              # (c, oh, ow) order
    return wcat, cb


def prepare_params(raw):
    """One-time: build the fused conv+pool operator and lane-aligned padded fc weights."""
    wcat, cb = build_fused_feature_operator(raw["conv_w"], raw["conv_b"])

    w1 = np.asarray(raw["fc1_w"], np.float32)            # (200, 500)
    b1 = np.asarray(raw["fc1_b"], np.float32).reshape(1, -1)
    w2 = np.asarray(raw["fc2_w"], np.float32)            # (500, 14)
    b2 = np.asarray(raw["fc2_b"], np.float32).reshape(1, -1)

    w1p = np.zeros((TAP_BAND, FC1_PAD), np.float32)      # (256, 512)
    w1p[:w1.shape[0], :w1.shape[1]] = w1
    w2p = np.zeros((FC1_PAD, FC2_PAD), np.float32)       # (512, 128)
    w2p[:w2.shape[0], :w2.shape[1]] = w2
    b1p = np.zeros((1, FC1_PAD), np.float32)
    b1p[0, :b1.shape[1]] = b1
    b2p = np.zeros((1, FC2_PAD), np.float32)
    b2p[0, :b2.shape[1]] = b2

    bias_cat = np.concatenate([cb, b1p, b2p], axis=1)    # (1, 256+512+128) = (1, 896)

    return {
        "wcat": jnp.asarray(wcat),                       # (200, 1024)
        "w1": jnp.asarray(w1p),
        "w2": jnp.asarray(w2p),
        "bias_cat": jnp.asarray(bias_cat),
        "n_logits": int(w2.shape[1]),                    # 14
    }


# ------------------------------ forward wrapper ----------------------------------------

def _choose_batch_block(B, batch_block):
    """Multiple-of-8 batch block; >= 2 grid blocks once B >= 16 (v7x has 2 TensorCores)."""
    if B < 16:
        return _round_up(B, 8)
    return min(_round_up(-(-B // 2), 8), batch_block)


def minicnn_forward(x_nchw, params, *, batch_block=512):
    """Full MiniCNN forward.  Input layout: NCHW (PyTorch convention)."""
    B = x_nchw.shape[0]
    x2 = x_nchw.reshape(B, -1).astype(jnp.float32)       # free row-major NCHW flatten -> (B, 200)

    wcat = params["wcat"]
    bias = params["bias_cat"]
    w1, w2 = params["w1"], params["w2"]
    n_logits = params["n_logits"]

    feat_in = x2.shape[1]
    n_out_pad = w2.shape[1]                              # 128

    bb = _choose_batch_block(B, batch_block)
    nb = -(-B // bb)
    Bp = nb * bb
    if Bp != B:
        x2 = jnp.pad(x2, ((0, Bp - B), (0, 0)))

    grid_spec = pltpu.PrefetchScalarGridSpec(
        num_scalar_prefetch=0,
        grid=(nb,),
        in_specs=[
            pl.BlockSpec((bb, feat_in), lambda i: (i, 0)),   # batch-tiled input
            pl.BlockSpec(wcat.shape, lambda i: (0, 0)),      # grid-invariant weights:
            pl.BlockSpec(bias.shape, lambda i: (0, 0)),      #   DMA'd once, reused per block
            pl.BlockSpec(w1.shape, lambda i: (0, 0)),
            pl.BlockSpec(w2.shape, lambda i: (0, 0)),
        ],
        out_specs=pl.BlockSpec((bb, n_out_pad), lambda i: (i, 0)),   # lane-dense (bb, 128) store
    )

    out = pl.pallas_call(
        _fused_minicnn_kernel,
        out_shape=jax.ShapeDtypeStruct((Bp, n_out_pad), jnp.float32),
        grid_spec=grid_spec,
        compiler_params=pltpu.CompilerParams(dimension_semantics=("parallel",)),
    )(x2, wcat, bias, w1, w2)

    return out[:B, :n_logits]


# ------------------------------ reference (pure JAX) ------------------------------------

def minicnn_reference(x_nchw, raw):
    """Straightforward im2col conv + pool + NCHW flatten + fc1 + fc2 in plain JAX."""
    B = x_nchw.shape[0]
    x = jnp.transpose(x_nchw, (0, 2, 3, 1))                              # NCHW -> NHWC
    H, W, C = x.shape[1], x.shape[2], x.shape[3]
    xp = jnp.pad(x, ((0, 0), (1, 1), (1, 1), (0, 0)))
    cols = [xp[:, di:di + H, dj:dj + W, :] for di in range(3) for dj in range(3)]
    patches = jnp.stack(cols, axis=3).reshape(B * H * W, 9 * C)
    conv = patches @ raw["conv_w"].reshape(9 * C, -1) + raw["conv_b"]
    conv = jnp.maximum(conv, 0.0).reshape(B, H, W, -1)
    pooled = jnp.max(conv.reshape(B, H // 2, 2, W // 2, 2, -1), axis=(2, 4))
    feat = jnp.transpose(pooled, (0, 3, 1, 2)).reshape(B, -1)            # NCHW flatten
    h = feat @ raw["fc1_w"] + raw["fc1_b"]
    return h @ raw["fc2_w"] + raw["fc2_b"]


# ----------------------------------- main -----------------------------------------------

if __name__ == "__main__":
    key = jax.random.PRNGKey(0)
    kx, k1, k2, k3, k4, k5, k6 = jax.random.split(key, 7)

    B, C_in, H, W = 2, 2, 10, 10
    C_out = 8

    x_nchw = jax.random.normal(kx, (B, C_in, H, W), jnp.float32)

    raw = {
        # features: Conv2d(2, 8, 3, padding=1) weight in (K, K, Cin, Cout) layout
        "conv_w": jax.random.normal(k1, (3, 3, C_in, C_out), jnp.float32)
        * (1.0 / (3 * 3 * C_in) ** 0.5),
        "conv_b": jax.random.normal(k2, (1, C_out), jnp.float32) * 0.1,
        # fc1: Linear(200, 500) stored as (in, out); fc2: Linear(500, 14)
        "fc1_w": jax.random.normal(k3, (200, 500), jnp.float32) * (1.0 / 200 ** 0.5),
        "fc1_b": jax.random.normal(k4, (1, 500), jnp.float32) * 0.1,
        "fc2_w": jax.random.normal(k5, (500, 14), jnp.float32) * (1.0 / 500 ** 0.5),
        "fc2_b": jax.random.normal(k6, (1, 14), jnp.float32) * 0.1,
    }

    params = prepare_params(raw)        # one-time: fused conv+pool operator + padded fc weights

    fwd = jax.jit(lambda x: minicnn_forward(x, params))
    out = jax.block_until_ready(fwd(x_nchw))

    ref = minicnn_reference(x_nchw, raw)
    assert out.shape == (B, 14), out.shape
    assert jnp.allclose(out, ref, atol=1e-4, rtol=1e-4), float(jnp.max(jnp.abs(out - ref)))

    print("KERNEL_OK")
</pallas_src>

<mosaic_0001>
module attributes {stable_mosaic.version = 11 : i64} {
  func.func @_fused_minicnn_kernel(%arg0: i32, %arg1: memref<8x200xf32, #tpu.memory_space<vmem>>, %arg2: memref<200x1024xf32, #tpu.memory_space<vmem>>, %arg3: memref<1x896xf32, #tpu.memory_space<vmem>>, %arg4: memref<256x512xf32, #tpu.memory_space<vmem>>, %arg5: memref<512x128xf32, #tpu.memory_space<vmem>>, %arg6: memref<8x128xf32, #tpu.memory_space<vmem>>) attributes {dimension_semantics = [#tpu.dimension_semantics<parallel>], iteration_bounds = array<i64: 1>, scalar_prefetch = 0 : i64, scratch_operands = 0 : i64, tpu.core_type = #tpu.core_type<tc>, window_params = [{transform_indices = @transform_0, window_bounds = array<i64: 8, 200>}, {pipeline_mode = #tpu.pipeline_mode<synchronous>, transform_indices = @transform_1, window_bounds = array<i64: 200, 1024>}, {pipeline_mode = #tpu.pipeline_mode<synchronous>, transform_indices = @transform_2, window_bounds = array<i64: 1, 896>}, {pipeline_mode = #tpu.pipeline_mode<synchronous>, transform_indices = @transform_3, window_bounds = array<i64: 256, 512>}, {pipeline_mode = #tpu.pipeline_mode<synchronous>, transform_indices = @transform_4, window_bounds = array<i64: 512, 128>}, {transform_indices = @transform_5, window_bounds = array<i64: 8, 128>}]} {
    %c0 = arith.constant 0 : index
    %c0_0 = arith.constant 0 : index
    %0 = vector.load %arg1[%c0, %c0_0] : memref<8x200xf32, #tpu.memory_space<vmem>>, vector<8x200xf32>
    %c0_1 = arith.constant 0 : index
    %c0_2 = arith.constant 0 : index
    %1 = vector.load %arg2[%c0_1, %c0_2] : memref<200x1024xf32, #tpu.memory_space<vmem>>, vector<200x1024xf32>
    %cst = arith.constant dense<0.000000e+00> : vector<8x1024xf32>
    %2 = tpu.matmul %0, %1, %cst {dimension_numbers = #tpu.dot_dimension_numbers<[1], [0], [0], [1], [0, 0, 1, 1], [], []>} : vector<8x200xf32>, vector<200x1024xf32>, vector<8x1024xf32> -> vector<8x1024xf32>
    %3 = vector.extract_strided_slice %2 {offsets = [0, 0], sizes = [8, 256], strides = [1, 1]} : vector<8x1024xf32> to vector<8x256xf32>
    %4 = vector.extract_strided_slice %2 {offsets = [0, 256], sizes = [8, 256], strides = [1, 1]} : vector<8x1024xf32> to vector<8x256xf32>
    %5 = vector.extract_strided_slice %2 {offsets = [0, 512], sizes = [8, 256], strides = [1, 1]} : vector<8x1024xf32> to vector<8x256xf32>
    %6 = vector.extract_strided_slice %2 {offsets = [0, 768], sizes = [8, 256], strides = [1, 1]} : vector<8x1024xf32> to vector<8x256xf32>
    %7 = arith.maximumf %3, %4 : vector<8x256xf32>
    %8 = arith.maximumf %5, %6 : vector<8x256xf32>
    %9 = arith.maximumf %7, %8 : vector<8x256xf32>
    %c0_3 = arith.constant 0 : index
    %c0_4 = arith.constant 0 : index
    %10 = vector.load %arg3[%c0_3, %c0_4] : memref<1x896xf32, #tpu.memory_space<vmem>>, vector<1x256xf32>
    %11 = vector.broadcast %10 : vector<1x256xf32> to vector<8x256xf32>
    %12 = arith.addf %9, %11 : vector<8x256xf32>
    %cst_5 = arith.constant 0.000000e+00 : f32
    %13 = vector.broadcast %cst_5 : f32 to vector<8x256xf32>
    %14 = arith.maximumf %12, %13 : vector<8x256xf32>
    %c0_6 = arith.constant 0 : index
    %c0_7 = arith.constant 0 : index
    %15 = vector.load %arg4[%c0_6, %c0_7] : memref<256x512xf32, #tpu.memory_space<vmem>>, vector<256x512xf32>
    %cst_8 = arith.constant dense<0.000000e+00> : vector<8x512xf32>
    %16 = tpu.matmul %14, %15, %cst_8 {dimension_numbers = #tpu.dot_dimension_numbers<[1], [0], [0], [1], [0, 0, 1, 1], [], []>} : vector<8x256xf32>, vector<256x512xf32>, vector<8x512xf32> -> vector<8x512xf32>
    %c0_9 = arith.constant 0 : index
    %c256 = arith.constant 256 : index
    %17 = vector.load %arg3[%c0_9, %c256] : memref<1x896xf32, #tpu.memory_space<vmem>>, vector<1x512xf32>
    %18 = vector.broadcast %17 : vector<1x512xf32> to vector<8x512xf32>
    %19 = arith.addf %16, %18 : vector<8x512xf32>
    %c0_10 = arith.constant 0 : index
    %c0_11 = arith.constant 0 : index
    %20 = vector.load %arg5[%c0_10, %c0_11] : memref<512x128xf32, #tpu.memory_space<vmem>>, vector<512x128xf32>
    %cst_12 = arith.constant dense<0.000000e+00> : vector<8x128xf32>
    %21 = tpu.matmul %19, %20, %cst_12 {dimension_numbers = #tpu.dot_dimension_numbers<[1], [0], [0], [1], [0, 0, 1, 1], [], []>} : vector<8x512xf32>, vector<512x128xf32>, vector<8x128xf32> -> vector<8x128xf32>
    %c0_13 = arith.constant 0 : index
    %c768 = arith.constant 768 : index
    %22 = vector.load %arg3[%c0_13, %c768] : memref<1x896xf32, #tpu.memory_space<vmem>>, vector<1x128xf32>
    %23 = vector.broadcast %22 : vector<1x128xf32> to vector<8x128xf32>
    %24 = arith.addf %21, %23 : vector<8x128xf32>
    %c0_14 = arith.constant 0 : index
    %c0_15 = arith.constant 0 : index
    %25 = vector.load %arg6[%c0_14, %c0_15] : memref<8x128xf32, #tpu.memory_space<vmem>>, vector<8x128xf32>
    tpu.vector_store %arg6[%c0_14, %c0_15], %24 {strides = array<i32>} : memref<8x128xf32, #tpu.memory_space<vmem>>, vector<8x128xf32>,
    return
  }
  func.func @transform_0(%arg0: i32) -> (i32, i32) {
    %c0_i32 = arith.constant 0 : i32
    %c0_i32_0 = arith.constant 0 : i32
    return %arg0, %c0_i32 : i32, i32
  }
  func.func @transform_1(%arg0: i32) -> (i32, i32) {
    %c0_i32 = arith.constant 0 : i32
    %c0_i32_0 = arith.constant 0 : i32
    %c0_i32_1 = arith.constant 0 : i32
    return %c0_i32, %c0_i32_0 : i32, i32
  }
  func.func @transform_2(%arg0: i32) -> (i32, i32) {
    %c0_i32 = arith.constant 0 : i32
    %c0_i32_0 = arith.constant 0 : i32
    %c0_i32_1 = arith.constant 0 : i32
    return %c0_i32, %c0_i32_0 : i32, i32
  }
  func.func @transform_3(%arg0: i32) -> (i32, i32) {
    %c0_i32 = arith.constant 0 : i32
    %c0_i32_0 = arith.constant 0 : i32
    %c0_i32_1 = arith.constant 0 : i32
    return %c0_i32, %c0_i32_0 : i32, i32
  }
  func.func @transform_4(%arg0: i32) -> (i32, i32) {
    %c0_i32 = arith.constant 0 : i32
    %c0_i32_0 = arith.constant 0 : i32
    %c0_i32_1 = arith.constant 0 : i32
    return %c0_i32, %c0_i32_0 : i32, i32
  }
  func.func @transform_5(%arg0: i32) -> (i32, i32) {
    %c0_i32 = arith.constant 0 : i32
    %c0_i32_0 = arith.constant 0 : i32
    return %arg0, %c0_i32 : i32, i32
  }
}

</mosaic_0001>

<bundles_post_ra>
// kernel: _lambda_.1
= control target key start
LH: loop header
LB: loop body
LE: loop exit
PB: predicated region body
PF: predicated region fallthrough
CT: control target
= control target key end

     0   :  { %10 = vsyncpa [#allocation3], 0  ;;  %s1327_s0 = inlined_call_operand.vmem [shape: f32[8,200], index: 0, kind: input, shape index: {}]   ;;  %s1328_s1 = inlined_call_operand.hbm [shape: f32[200,1024], index: 1, kind: input, shape index: {}]   ;;  %s1329_s2 = inlined_call_operand.vmem [shape: f32[1,896], index: 2, kind: input, shape index: {}]   ;;  %s1330_s3 = inlined_call_operand.hbm [shape: f32[256,512], index: 3, kind: input, shape index: {}]   ;;  %s1331_s4 = inlined_call_operand.hbm [shape: f32[512,128], index: 4, kind: input, shape index: {}]   ;;  %s1332_s5 = inlined_call_operand.vmem [shape: f32[8,128], index: 5, kind: output, shape index: {}]  }
   0x1   :  { %11 = vsyncpa [#allocation5], 0  ;;  %s1231_s18 = smov [#allocation4]  }
   0x2   :  { %s33_s19 = sshll.u32 %s1231_s18, 4  ;;  %s34_s19 = int_to_ptr.vmem [resolvable:$true] %s33_s19 }
   0x3   :  { %s1175_s20 = scalar_lea.vmem %s34_s19, 16384  ;;  %p1180_p1 = scmp.lt.s32.totalorder %s34_s19, %s34_s19 }
   0x4   :  { %p1176_p0 = scmp.ne.s32.totalorder %s34_s19, %s1175_s20  ;;  %p1181_p2 = scmp.lt.s32.totalorder %s1175_s20, %s1175_s20 }
   0x6   :  { %p1182_p3 = por %p1181_p2, %p1180_p1 }
   0x8   :  { %p1183_p4 = pnand %p1182_p3, %p1176_p0 }
   0xa   :  { %1186 = shalt.err (!%p1183_p4)
}
   0xb   :  { %s1232_s21 = smov 512   ;;  %s1233_s22 = smov 32  }
   0xc   :  { %39 = dma.hbm_to_vmem [thread:$0]  %s1330_s3, 16384, %s34_s19, [#allocation5], %s1232_s21, %s1232_s21, %s1233_s22  }
   0xd   :  { %s1234_s25 = smov [#allocation2]  }
   0xe   :  { %s19_s26 = sshll.u32 %s1234_s25, 4  ;;  %s20_s26 = int_to_ptr.vmem [resolvable:$true] %s19_s26 }
   0xf   :  { %s1195_s27 = scalar_lea.vmem %s20_s26, 25600  ;;  %p1200_p6 = scmp.lt.s32.totalorder %s20_s26, %s20_s26 }
  0x10   :  { %p1196_p5 = scmp.ne.s32.totalorder %s20_s26, %s1195_s27  ;;  %p1201_p7 = scmp.lt.s32.totalorder %s1195_s27, %s1195_s27 }
  0x12   :  { %p1202_p8 = por %p1201_p7, %p1200_p6 }
  0x14   :  { %p1203_p9 = pnand %p1202_p8, %p1196_p5 }
  0x16   :  { %1206 = shalt.err (!%p1203_p9)
}
  0x17   :  { %s1235_s28 = smov 1024   ;;  %s1236_s29 = smov 64  }
  0x18   :  { %25 = dma.hbm_to_vmem [thread:$0]  %s1328_s1, 25600, %s20_s26, [#allocation3], %s1235_s28, %s1235_s28, %s1236_s29  }
  0x19   :  { %s1237_s7 = smov [#allocation6]  }
  0x1a   :  { %s45_s8 = sshll.u32 %s1237_s7, 4  ;;  %s46_s8 = int_to_ptr.vmem [resolvable:$true] %s45_s8 }
  0x1b   :  { %s1215_s3 = scalar_lea.vmem %s46_s8, 8192  ;;  %p1220_p11 = scmp.lt.s32.totalorder %s46_s8, %s46_s8 }
  0x1c   :  { %p1216_p10 = scmp.ne.s32.totalorder %s46_s8, %s1215_s3  ;;  %p1221_p12 = scmp.lt.s32.totalorder %s1215_s3, %s1215_s3 }
  0x1e   :  { %p1222_p13 = por %p1221_p12, %p1220_p11 }
  0x20   :  { %p1223_p0 = pnand %p1222_p13, %p1216_p10 }
  0x22   :  { %1226 = shalt.err (!%p1223_p0)
}
  0x23   :  { %s1238_s9 = smov 128   ;;  %s1239_s10 = smov 8  }
  0x24   :  { %51 = dma.hbm_to_vmem [thread:$0]  %s1331_s4, 8192, %s46_s8, [#allocation5], %s1238_s9, %s1238_s9, %s1239_s10  }
  0x25   :  { %1227 = dma.done.wait [#allocation3], 25600  }
  0x26   :  { %1228 = vsyncadd [#allocation3], 4294941696 }
  0x27   :  { %1229 = dma.done.wait [#allocation5], 24576  }
  0x28   :  { %1230 = vsyncadd [#allocation5], 4294942720  ;;  %v184_v0 = vld [vmem:[#allocation2 + $0x3c8] sm:$0xff]  ;;  %v186_v1 = vld [vmem:[#allocation2 + $0x3d8] sm:$0xff]  ;;  %vm263_vm0 = vcmask 588800  }
  0x29   :  { %v183_v2 = vld [vmem:[#allocation2 + $0x3c0] sm:$0xff]  ;;  %267 = vmatprep.subr.mxu0 %v184_v0  ;;  %338 = vmatprep.subr.mxu1 %v186_v1  ;;  %v185_v3 = vld [vmem:[#allocation2 + $0x3d0] sm:$0xff]  ;;  %v176_v4 = vld [vmem:[#allocation2 + $0x388] sm:$0xff] }
  0x2a   :  { %v178_v5 = vld [vmem:[#allocation2 + $0x398] sm:$0xff]  ;;  %268 = vmatpush1.msra.mxu0 %v183_v2  ;;  %339 = vmatpush1.msra.mxu1 %v185_v3  ;;  %v175_v6 = vld [vmem:[#allocation2 + $0x380] sm:$0xff]  ;;  %v177_v7 = vld [vmem:[#allocation2 + $0x390] sm:$0xff] }
  0x2b   :  { %v168_v8 = vld [vmem:[#allocation2 + $0x348] sm:$0xff]  ;;  %269 = vmatprep.subr.mxu0 %v176_v4  ;;  %340 = vmatprep.subr.mxu1 %v178_v5  ;;  %v170_v9 = vld [vmem:[#allocation2 + $0x358] sm:$0xff]  ;;  %v167_v10 = vld [vmem:[#allocation2 + $0x340] sm:$0xff] }
  0x2c   :  { %v169_v11 = vld [vmem:[#allocation2 + $0x350] sm:$0xff]  ;;  %270 = vmatpush1.msra.mxu0 %v175_v6  ;;  %341 = vmatpush1.msra.mxu1 %v177_v7  ;;  %v160_v12 = vld [vmem:[#allocation2 + $0x308] sm:$0xff]  ;;  %v162_v13 = vld [vmem:[#allocation2 + $0x318] sm:$0xff] }
  0x2d   :  { %271 = vmatprep.subr.mxu0 %v168_v8  ;;  %342 = vmatprep.subr.mxu1 %v170_v9  ;;  %v159_v14 = vld [vmem:[#allocation2 + $0x300] sm:$0xff]  ;;  %v161_v15 = vld [vmem:[#allocation2 + $0x310] sm:$0xff]  ;;  %v152_v16 = vld [vmem:[#allocation2 + $0x2c8] sm:$0xff] }
  0x2e   :  { %272 = vmatpush1.msra.mxu0 %v167_v10  ;;  %343 = vmatpush1.msra.mxu1 %v169_v11  ;;  %v154_v17 = vld [vmem:[#allocation2 + $0x2d8] sm:$0xff]  ;;  %v151_v18 = vld [vmem:[#allocation2 + $0x2c0] sm:$0xff]  ;;  %v153_v19 = vld [vmem:[#allocation2 + $0x2d0] sm:$0xff] }
  0x2f   :  { %273 = vmatprep.subr.mxu0 %v160_v12  ;;  %344 = vmatprep.subr.mxu1 %v162_v13  ;;  %v144_v20 = vld [vmem:[#allocation2 + $0x288] sm:$0xff]  ;;  %v146_v21 = vld [vmem:[#allocation2 + $0x298] sm:$0xff]  ;;  %v143_v22 = vld [vmem:[#allocation2 + $0x280] sm:$0xff] }
  0x30   :  { %274 = vmatpush1.msra.mxu0 %v159_v14  ;;  %345 = vmatpush1.msra.mxu1 %v161_v15  ;;  %v145_v23 = vld [vmem:[#allocation2 + $0x290] sm:$0xff]  ;;  %v136_v24 = vld [vmem:[#allocation2 + $0x248] sm:$0xff]  ;;  %v138_v25 = vld [vmem:[#allocation2 + $0x258] sm:$0xff] }
  0x31   :  { %275 = vmatprep.subr.mxu0 %v152_v16  ;;  %346 = vmatprep.subr.mxu1 %v154_v17  ;;  %v135_v26 = vld [vmem:[#allocation2 + $0x240] sm:$0xff]  ;;  %v137_v27 = vld [vmem:[#allocation2 + $0x250] sm:$0xff]  ;;  %v128_v28 = vld [vmem:[#allocation2 + $0x208] sm:$0xff] }
  0x32   :  { %276 = vmatpush1.msra.mxu0 %v151_v18  ;;  %347 = vmatpush1.msra.mxu1 %v153_v19  ;;  %v130_v29 = vld [vmem:[#allocation2 + $0x218] sm:$0xff]  ;;  %v127_v30 = vld [vmem:[#allocation2 + $0x200] sm:$0xff]  ;;  %v129_v31 = vld [vmem:[#allocation2 + $0x210] sm:$0xff] }
  0x33   :  { %277 = vmatprep.subr.mxu0 %v144_v20  ;;  %348 = vmatprep.subr.mxu1 %v146_v21  ;;  %v120_v32 = vld [vmem:[#allocation2 + $0x1c8] sm:$0xff]  ;;  %v122_v33 = vld [vmem:[#allocation2 + $0x1d8] sm:$0xff]  ;;  %v119_v34 = vld [vmem:[#allocation2 + $0x1c0] sm:$0xff] }
  0x34   :  { %278 = vmatpush1.msra.mxu0 %v143_v22  ;;  %349 = vmatpush1.msra.mxu1 %v145_v23  ;;  %v121_v35 = vld [vmem:[#allocation2 + $0x1d0] sm:$0xff]  ;;  %v112_v36 = vld [vmem:[#allocation2 + $0x188] sm:$0xff]  ;;  %v114_v37 = vld [vmem:[#allocation2 + $0x198] sm:$0xff] }
  0x35   :  { %279 = vmatprep.subr.mxu0 %v136_v24  ;;  %350 = vmatprep.subr.mxu1 %v138_v25  ;;  %v111_v38 = vld [vmem:[#allocation2 + $0x180] sm:$0xff]  ;;  %v113_v39 = vld [vmem:[#allocation2 + $0x190] sm:$0xff]  ;;  %v104_v40 = vld [vmem:[#allocation2 + $0x148] sm:$0xff] }
  0x36   :  { %280 = vmatpush1.msra.mxu0 %v135_v26  ;;  %351 = vmatpush1.msra.mxu1 %v137_v27  ;;  %v106_v41 = vld [vmem:[#allocation2 + $0x158] sm:$0xff]  ;;  %v103_v42 = vld [vmem:[#allocation2 + $0x140] sm:$0xff]  ;;  %v105_v43 = vld [vmem:[#allocation2 + $0x150] sm:$0xff] }
  0x37   :  { %281 = vmatprep.subr.mxu0 %v128_v28  ;;  %352 = vmatprep.subr.mxu1 %v130_v29  ;;  %v96_v44 = vld [vmem:[#allocation2 + $0x108] sm:$0xff]  ;;  %v98_v45 = vld [vmem:[#allocation2 + $0x118] sm:$0xff]  ;;  %v95_v46 = vld [vmem:[#allocation2 + $0x100] sm:$0xff] }
  0x38   :  { %282 = vmatpush1.msra.mxu0 %v127_v30  ;;  %353 = vmatpush1.msra.mxu1 %v129_v31  ;;  %v97_v47 = vld [vmem:[#allocation2 + $0x110] sm:$0xff]  ;;  %v88_v48 = vld [vmem:[#allocation2 + $0xc8] sm:$0xff]  ;;  %v90_v49 = vld [vmem:[#allocation2 + $0xd8] sm:$0xff] }
  0x39   :  { %283 = vmatprep.subr.mxu0 %v120_v32  ;;  %354 = vmatprep.subr.mxu1 %v122_v33  ;;  %v87_v50 = vld [vmem:[#allocation2 + $0xc0] sm:$0xff]  ;;  %v89_v51 = vld [vmem:[#allocation2 + $0xd0] sm:$0xff]  ;;  %v80_v52 = vld [vmem:[#allocation2 + $0x88] sm:$0xff] }
  0x3a   :  { %284 = vmatpush1.msra.mxu0 %v119_v34  ;;  %355 = vmatpush1.msra.mxu1 %v121_v35  ;;  %v82_v53 = vld [vmem:[#allocation2 + $0x98] sm:$0xff]  ;;  %v79_v54 = vld [vmem:[#allocation2 + $0x80] sm:$0xff]  ;;  %v81_v55 = vld [vmem:[#allocation2 + $0x90] sm:$0xff] }
  0x3b   :  { %285 = vmatprep.subr.mxu0 %v112_v36  ;;  %356 = vmatprep.subr.mxu1 %v114_v37  ;;  %v72_v56 = vld [vmem:[#allocation2 + $0x48] sm:$0xff]  ;;  %v74_v57 = vld [vmem:[#allocation2 + $0x58] sm:$0xff]  ;;  %v71_v58 = vld [vmem:[#allocation2 + $0x40] sm:$0xff] }
  0x3c   :  { %286 = vmatpush1.msra.mxu0 %v111_v38  ;;  %357 = vmatpush1.msra.mxu1 %v113_v39  ;;  %v73_v59 = vld [vmem:[#allocation2 + $0x50] sm:$0xff]  ;;  %v64_v60 = vld [vmem:[#allocation2 + $0x8] sm:$0xff]  ;;  %v66_v61 = vld [vmem:[#allocation2 + $0x18] sm:$0xff] }
  0x3d   :  { %287 = vmatprep.subr.mxu0 %v104_v40  ;;  %358 = vmatprep.subr.mxu1 %v106_v41  ;;  %v63_v62 = vld [vmem:[#allocation2] sm:$0xff]  ;;  %v65_v63 = vld [vmem:[#allocation2 + $0x10] sm:$0xff]  ;;  %v256_v0 = vld [vmem:[#allocation2 + $0x608] sm:$0xff] }
  0x3e   :  { %288 = vmatpush1.msra.mxu0 %v103_v42  ;;  %359 = vmatpush1.msra.mxu1 %v105_v43  ;;  %v258_v1 = vld [vmem:[#allocation2 + $0x618] sm:$0xff]  ;;  %v255_v2 = vld [vmem:[#allocation2 + $0x600] sm:$0xff]  ;;  %v257_v3 = vld [vmem:[#allocation2 + $0x610] sm:$0xff] }
  0x3f   :  { %289 = vmatprep.subr.mxu0 %v96_v44  ;;  %360 = vmatprep.subr.mxu1 %v98_v45  ;;  %v248_v4 = vld [vmem:[#allocation2 + $0x5c8] sm:$0xff]  ;;  %v250_v5 = vld [vmem:[#allocation2 + $0x5d8] sm:$0xff]  ;;  %v247_v6 = vld [vmem:[#allocation2 + $0x5c0] sm:$0xff] }
  0x40   :  { %290 = vmatpush1.msra.mxu0 %v95_v46  ;;  %361 = vmatpush1.msra.mxu1 %v97_v47  ;;  %v249_v7 = vld [vmem:[#allocation2 + $0x5d0] sm:$0xff]  ;;  %v240_v8 = vld [vmem:[#allocation2 + $0x588] sm:$0xff]  ;;  %v242_v9 = vld [vmem:[#allocation2 + $0x598] sm:$0xff] }
  0x41   :  { %291 = vmatprep.subr.mxu0 %v88_v48  ;;  %362 = vmatprep.subr.mxu1 %v90_v49  ;;  %v239_v10 = vld [vmem:[#allocation2 + $0x580] sm:$0xff]  ;;  %v241_v11 = vld [vmem:[#allocation2 + $0x590] sm:$0xff]  ;;  %v232_v12 = vld [vmem:[#allocation2 + $0x548] sm:$0xff] }
  0x42   :  { %292 = vmatpush1.msra.mxu0 %v87_v50  ;;  %363 = vmatpush1.msra.mxu1 %v89_v51  ;;  %v234_v13 = vld [vmem:[#allocation2 + $0x558] sm:$0xff]  ;;  %v231_v14 = vld [vmem:[#allocation2 + $0x540] sm:$0xff]  ;;  %v233_v15 = vld [vmem:[#allocation2 + $0x550] sm:$0xff] }
  0x43   :  { %293 = vmatprep.subr.mxu0 %v80_v52  ;;  %364 = vmatprep.subr.mxu1 %v82_v53  ;;  %v224_v16 = vld [vmem:[#allocation2 + $0x508] sm:$0xff]  ;;  %v226_v17 = vld [vmem:[#allocation2 + $0x518] sm:$0xff]  ;;  %v223_v18 = vld [vmem:[#allocation2 + $0x500] sm:$0xff] }
  0x44   :  { %294 = vmatpush1.msra.mxu0 %v79_v54  ;;  %365 = vmatpush1.msra.mxu1 %v81_v55  ;;  %v225_v19 = vld [vmem:[#allocation2 + $0x510] sm:$0xff]  ;;  %v216_v20 = vld [vmem:[#allocation2 + $0x4c8] sm:$0xff]  ;;  %v218_v21 = vld [vmem:[#allocation2 + $0x4d8] sm:$0xff] }
  0x45   :  { %295 = vmatprep.subr.mxu0 %v72_v56  ;;  %366 = vmatprep.subr.mxu1 %v74_v57  ;;  %v215_v22 = vld [vmem:[#allocation2 + $0x4c0] sm:$0xff]  ;;  %v217_v23 = vld [vmem:[#allocation2 + $0x4d0] sm:$0xff]  ;;  %v208_v24 = vld [vmem:[#allocation2 + $0x488] sm:$0xff] }
  0x46   :  { %296 = vmatpush1.msra.mxu0 %v71_v58  ;;  %367 = vmatpush1.msra.mxu1 %v73_v59  ;;  %v210_v25 = vld [vmem:[#allocation2 + $0x498] sm:$0xff]  ;;  %v207_v26 = vld [vmem:[#allocation2 + $0x480] sm:$0xff]  ;;  %v209_v27 = vld [vmem:[#allocation2 + $0x490] sm:$0xff] }
  0x47   :  { %297 = vmatprep.subr.mxu0 %v64_v60  ;;  %368 = vmatprep.subr.mxu1 %v66_v61  ;;  %v200_v28 = vld [vmem:[#allocation2 + $0x448] sm:$0xff]  ;;  %v202_v29 = vld [vmem:[#allocation2 + $0x458] sm:$0xff]  ;;  %v199_v30 = vld [vmem:[#allocation2 + $0x440] sm:$0xff] }
  0x48   :  { %298 = vmatpush1.msra.mxu0 %v63_v62  ;;  %369 = vmatpush1.msra.mxu1 %v65_v63  ;;  %v201_v31 = vld [vmem:[#allocation2 + $0x450] sm:$0xff]  ;;  %v192_v32 = vld [vmem:[#allocation2 + $0x408] sm:$0xff]  ;;  %v194_v33 = vld [vmem:[#allocation2 + $0x418] sm:$0xff] }
  0x49   :  { %313 = vmatprep.subr.mxu0 %v256_v0  ;;  %384 = vmatprep.subr.mxu1 %v258_v1  ;;  %v191_v34 = vld [vmem:[#allocation2 + $0x400] sm:$0xff]  ;;  %v1282_v35 = vld [vmem:[%s1327_s0 + $0x8] sm:$0xff]  ;;  %v193_v36 = vld [vmem:[#allocation2 + $0x410] sm:$0xff] }
  0x4a   :  { %314 = vmatpush2.msra.mxu0 %v255_v2  ;;  %385 = vmatpush2.msra.mxu1 %v257_v3  ;;  %v1287_v37 = vld [vmem:[%s1327_s0] sm:$0xff]  ;;  %v188_v38 = vld [vmem:[#allocation2 + $0x3e8] sm:$0xff]  ;;  %v190_v39 = vld [vmem:[#allocation2 + $0x3f8] sm:$0xff] }
  0x4b   :  { %315 = vmatprep.subr.mxu0 %v248_v4  ;;  %386 = vmatprep.subr.mxu1 %v250_v5  ;;  %v187_v40 = vld [vmem:[#allocation2 + $0x3e0] sm:$0xff]  ;;  %v189_v41 = vld [vmem:[#allocation2 + $0x3f0] sm:$0xff]  ;;  %v180_v42 = vld [vmem:[#allocation2 + $0x3a8] sm:$0xff] }
  0x4c   :  { %316 = vmatpush2.msra.mxu0 %v247_v6  ;;  %387 = vmatpush2.msra.mxu1 %v249_v7  ;;  %v182_v43 = vld [vmem:[#allocation2 + $0x3b8] sm:$0xff]  ;;  %v179_v44 = vld [vmem:[#allocation2 + $0x3a0] sm:$0xff]  ;;  %v181_v45 = vld [vmem:[#allocation2 + $0x3b0] sm:$0xff] }
  0x4d   :  { %317 = vmatprep.subr.mxu0 %v240_v8  ;;  %388 = vmatprep.subr.mxu1 %v242_v9  ;;  %v172_v46 = vld [vmem:[#allocation2 + $0x368] sm:$0xff]  ;;  %v174_v47 = vld [vmem:[#allocation2 + $0x378] sm:$0xff]  ;;  %v171_v48 = vld [vmem:[#allocation2 + $0x360] sm:$0xff] }
  0x4e   :  { %318 = vmatpush2.msra.mxu0 %v239_v10  ;;  %389 = vmatpush2.msra.mxu1 %v241_v11  ;;  %v173_v49 = vld [vmem:[#allocation2 + $0x370] sm:$0xff]  ;;  %v164_v50 = vld [vmem:[#allocation2 + $0x328] sm:$0xff]  ;;  %v166_v51 = vld [vmem:[#allocation2 + $0x338] sm:$0xff] }
  0x4f   :  { %319 = vmatprep.subr.mxu0 %v232_v12  ;;  %390 = vmatprep.subr.mxu1 %v234_v13  ;;  %v163_v52 = vld [vmem:[#allocation2 + $0x320] sm:$0xff]  ;;  %v165_v53 = vld [vmem:[#allocation2 + $0x330] sm:$0xff]  ;;  %v156_v54 = vld [vmem:[#allocation2 + $0x2e8] sm:$0xff] }
  0x50   :  { %320 = vmatpush2.msra.mxu0 %v231_v14  ;;  %391 = vmatpush2.msra.mxu1 %v233_v15  ;;  %v158_v55 = vld [vmem:[#allocation2 + $0x2f8] sm:$0xff]  ;;  %v155_v56 = vld [vmem:[#allocation2 + $0x2e0] sm:$0xff]  ;;  %v157_v57 = vld [vmem:[#allocation2 + $0x2f0] sm:$0xff] }
  0x51   :  { %321 = vmatprep.subr.mxu0 %v224_v16  ;;  %392 = vmatprep.subr.mxu1 %v226_v17  ;;  %v148_v58 = vld [vmem:[#allocation2 + $0x2a8] sm:$0xff]  ;;  %v150_v59 = vld [vmem:[#allocation2 + $0x2b8] sm:$0xff]  ;;  %v147_v60 = vld [vmem:[#allocation2 + $0x2a0] sm:$0xff] }
  0x52   :  { %322 = vmatpush2.msra.mxu0 %v223_v18  ;;  %393 = vmatpush2.msra.mxu1 %v225_v19  ;;  %v149_v61 = vld [vmem:[#allocation2 + $0x2b0] sm:$0xff]  ;;  %v140_v62 = vld [vmem:[#allocation2 + $0x268] sm:$0xff]  ;;  %v142_v63 = vld [vmem:[#allocation2 + $0x278] sm:$0xff] }
  0x53   :  { %323 = vmatprep.subr.mxu0 %v216_v20  ;;  %394 = vmatprep.subr.mxu1 %v218_v21  ;;  %v139_v0 = vld [vmem:[#allocation2 + $0x260] sm:$0xff]  ;;  %v141_v1 = vld [vmem:[#allocation2 + $0x270] sm:$0xff]  ;;  %v132_v2 = vld [vmem:[#allocation2 + $0x228] sm:$0xff] }
  0x54   :  { %324 = vmatpush2.msra.mxu0 %v215_v22  ;;  %395 = vmatpush2.msra.mxu1 %v217_v23  ;;  %v134_v3 = vld [vmem:[#allocation2 + $0x238] sm:$0xff]  ;;  %v131_v4 = vld [vmem:[#allocation2 + $0x220] sm:$0xff]  ;;  %v133_v5 = vld [vmem:[#allocation2 + $0x230] sm:$0xff] }
  0x55   :  { %325 = vmatprep.subr.mxu0 %v208_v24  ;;  %396 = vmatprep.subr.mxu1 %v210_v25  ;;  %v124_v6 = vld [vmem:[#allocation2 + $0x1e8] sm:$0xff]  ;;  %v126_v7 = vld [vmem:[#allocation2 + $0x1f8] sm:$0xff]  ;;  %v123_v8 = vld [vmem:[#allocation2 + $0x1e0] sm:$0xff] }
  0x56   :  { %326 = vmatpush2.msra.mxu0 %v207_v26  ;;  %397 = vmatpush2.msra.mxu1 %v209_v27  ;;  %v125_v9 = vld [vmem:[#allocation2 + $0x1f0] sm:$0xff]  ;;  %v116_v10 = vld [vmem:[#allocation2 + $0x1a8] sm:$0xff]  ;;  %v118_v11 = vld [vmem:[#allocation2 + $0x1b8] sm:$0xff] }
  0x57   :  { %327 = vmatprep.subr.mxu0 %v200_v28  ;;  %398 = vmatprep.subr.mxu1 %v202_v29  ;;  %v115_v12 = vld [vmem:[#allocation2 + $0x1a0] sm:$0xff]  ;;  %v117_v13 = vld [vmem:[#allocation2 + $0x1b0] sm:$0xff]  ;;  %v108_v14 = vld [vmem:[#allocation2 + $0x168] sm:$0xff] }
  0x58   :  { %328 = vmatpush2.msra.mxu0 %v199_v30  ;;  %399 = vmatpush2.msra.mxu1 %v201_v31  ;;  %v110_v15 = vld [vmem:[#allocation2 + $0x178] sm:$0xff]  ;;  %v107_v16 = vld [vmem:[#allocation2 + $0x160] sm:$0xff]  ;;  %v109_v17 = vld [vmem:[#allocation2 + $0x170] sm:$0xff] }
  0x59   :  { %329 = vmatprep.subr.mxu0 %v192_v32  ;;  %400 = vmatprep.subr.mxu1 %v194_v33  ;;  %v100_v18 = vld [vmem:[#allocation2 + $0x128] sm:$0xff]  ;;  %v102_v19 = vld [vmem:[#allocation2 + $0x138] sm:$0xff]  ;;  %v99_v20 = vld [vmem:[#allocation2 + $0x120] sm:$0xff] }
  0x5a   :  { %330 = vmatpush2.msra.mxu0 %v191_v34  ;;  %1083 = vmatprep.mubr.msk.f32.mxu0 %vm263_vm0, %v1282_v35  ;;  %v101_v21 = vld [vmem:[#allocation2 + $0x130] sm:$0xff]  ;;  %v92_v22 = vld [vmem:[#allocation2 + $0xe8] sm:$0xff]  ;;  %v94_v23 = vld [vmem:[#allocation2 + $0xf8] sm:$0xff] }
  0x5b   :  { %401 = vmatpush2.msra.mxu1 %v193_v36  ;;  %1084 = vmatprep.mubr.msk.f32.mxu1 %vm263_vm0, %v1282_v35  ;;  %v91_v24 = vld [vmem:[#allocation2 + $0xe0] sm:$0xff]  ;;  %v93_v25 = vld [vmem:[#allocation2 + $0xf0] sm:$0xff]  ;;  %v84_v26 = vld [vmem:[#allocation2 + $0xa8] sm:$0xff] }
  0x5c   :  { %332 = vmatmul.mubr.f32.vlgmr.msra.gmra.mxu0 %v1287_v37  ;;  %403 = vmatmul.mubr.f32.vlgmr.msra.gmra.mxu1 %v1287_v37  ;;  %v86_v27 = vld [vmem:[#allocation2 + $0xb8] sm:$0xff]  ;;  %v83_v28 = vld [vmem:[#allocation2 + $0xa0] sm:$0xff]  ;;  %v85_v29 = vld [vmem:[#allocation2 + $0xb0] sm:$0xff] }
  0x5d   :  { %409 = vmatprep.subr.mxu0 %v188_v38  ;;  %480 = vmatprep.subr.mxu1 %v190_v39  ;;  %v76_v30 = vld [vmem:[#allocation2 + $0x68] sm:$0xff]  ;;  %v78_v31 = vld [vmem:[#allocation2 + $0x78] sm:$0xff]  ;;  %v75_v32 = vld [vmem:[#allocation2 + $0x60] sm:$0xff] }
  0x5e   :  { %410 = vmatpush1.msra.mxu0 %v187_v40  ;;  %481 = vmatpush1.msra.mxu1 %v189_v41  ;;  %v77_v33 = vld [vmem:[#allocation2 + $0x70] sm:$0xff]  ;;  %v68_v34 = vld [vmem:[#allocation2 + $0x28] sm:$0xff]  ;;  %v70_v36 = vld [vmem:[#allocation2 + $0x38] sm:$0xff] }
  0x5f   :  { %411 = vmatprep.subr.mxu0 %v180_v42  ;;  %482 = vmatprep.subr.mxu1 %v182_v43  ;;  %v67_v38 = vld [vmem:[#allocation2 + $0x20] sm:$0xff]  ;;  %v69_v39 = vld [vmem:[#allocation2 + $0x30] sm:$0xff]  ;;  %v260_v40 = vld [vmem:[#allocation2 + $0x628] sm:$0xff] }
  0x60   :  { %412 = vmatpush1.msra.mxu0 %v179_v44  ;;  %483 = vmatpush1.msra.mxu1 %v181_v45  ;;  %v262_v41 = vld [vmem:[#allocation2 + $0x638] sm:$0xff]  ;;  %v259_v42 = vld [vmem:[#allocation2 + $0x620] sm:$0xff]  ;;  %v261_v43 = vld [vmem:[#allocation2 + $0x630] sm:$0xff] }
  0x61   :  { %413 = vmatprep.subr.mxu0 %v172_v46  ;;  %484 = vmatprep.subr.mxu1 %v174_v47  ;;  %v252_v44 = vld [vmem:[#allocation2 + $0x5e8] sm:$0xff]  ;;  %v254_v45 = vld [vmem:[#allocation2 + $0x5f8] sm:$0xff]  ;;  %v251_v46 = vld [vmem:[#allocation2 + $0x5e0] sm:$0xff] }
  0x62   :  { %414 = vmatpush1.msra.mxu0 %v171_v48  ;;  %485 = vmatpush1.msra.mxu1 %v173_v49  ;;  %v253_v47 = vld [vmem:[#allocation2 + $0x5f0] sm:$0xff]  ;;  %v244_v48 = vld [vmem:[#allocation2 + $0x5a8] sm:$0xff]  ;;  %v246_v49 = vld [vmem:[#allocation2 + $0x5b8] sm:$0xff] }
  0x63   :  { %415 = vmatprep.subr.mxu0 %v164_v50  ;;  %486 = vmatprep.subr.mxu1 %v166_v51  ;;  %v243_v50 = vld [vmem:[#allocation2 + $0x5a0] sm:$0xff]  ;;  %v245_v51 = vld [vmem:[#allocation2 + $0x5b0] sm:$0xff] }
  0x64   :  { %416 = vmatpush1.msra.mxu0 %v163_v52  ;;  %487 = vmatpush1.msra.mxu1 %v165_v53  ;;  %v236_v52 = vld [vmem:[#allocation2 + $0x568] sm:$0xff]  ;;  %v238_v53 = vld [vmem:[#allocation2 + $0x578] sm:$0xff] }
  0x65   :  { %417 = vmatprep.subr.mxu0 %v156_v54  ;;  %488 = vmatprep.subr.mxu1 %v158_v55  ;;  %v235_v54 = vld [vmem:[#allocation2 + $0x560] sm:$0xff]  ;;  %v237_v55 = vld [vmem:[#allocation2 + $0x570] sm:$0xff] }
  0x66   :  { %418 = vmatpush1.msra.mxu0 %v155_v56  ;;  %489 = vmatpush1.msra.mxu1 %v157_v57  ;;  %v228_v56 = vld [vmem:[#allocation2 + $0x528] sm:$0xff]  ;;  %v230_v57 = vld [vmem:[#allocation2 + $0x538] sm:$0xff] }
  0x67   :  { %419 = vmatprep.subr.mxu0 %v148_v58  ;;  %490 = vmatprep.subr.mxu1 %v150_v59  ;;  %v227_v58 = vld [vmem:[#allocation2 + $0x520] sm:$0xff]  ;;  %v229_v59 = vld [vmem:[#allocation2 + $0x530] sm:$0xff] }
  0x68   :  { %420 = vmatpush1.msra.mxu0 %v147_v60  ;;  %491 = vmatpush1.msra.mxu1 %v149_v61  ;;  %v220_v60 = vld [vmem:[#allocation2 + $0x4e8] sm:$0xff]  ;;  %v222_v61 = vld [vmem:[#allocation2 + $0x4f8] sm:$0xff] }
  0x69   :  { %421 = vmatprep.subr.mxu0 %v140_v62  ;;  %492 = vmatprep.subr.mxu1 %v142_v63  ;;  %v219_v62 = vld [vmem:[#allocation2 + $0x4e0] sm:$0xff]  ;;  %v221_v63 = vld [vmem:[#allocation2 + $0x4f0] sm:$0xff] }
  0x6a   :  { %422 = vmatpush1.msra.mxu0 %v139_v0  ;;  %493 = vmatpush1.msra.mxu1 %v141_v1  ;;  %v212_v0 = vld [vmem:[#allocation2 + $0x4a8] sm:$0xff]  ;;  %v214_v1 = vld [vmem:[#allocation2 + $0x4b8] sm:$0xff] }
  0x6b   :  { %423 = vmatprep.subr.mxu0 %v132_v2  ;;  %494 = vmatprep.subr.mxu1 %v134_v3  ;;  %v211_v2 = vld [vmem:[#allocation2 + $0x4a0] sm:$0xff]  ;;  %v213_v3 = vld [vmem:[#allocation2 + $0x4b0] sm:$0xff] }
  0x6c   :  { %424 = vmatpush1.msra.mxu0 %v131_v4  ;;  %495 = vmatpush1.msra.mxu1 %v133_v5  ;;  %v204_v4 = vld [vmem:[#allocation2 + $0x468] sm:$0xff]  ;;  %v206_v5 = vld [vmem:[#allocation2 + $0x478] sm:$0xff] }
  0x6d   :  { %425 = vmatprep.subr.mxu0 %v124_v6  ;;  %496 = vmatprep.subr.mxu1 %v126_v7  ;;  %v203_v6 = vld [vmem:[#allocation2 + $0x460] sm:$0xff]  ;;  %v205_v7 = vld [vmem:[#allocation2 + $0x470] sm:$0xff] }
  0x6e   :  { %426 = vmatpush1.msra.mxu0 %v123_v8  ;;  %497 = vmatpush1.msra.mxu1 %v125_v9  ;;  %v196_v8 = vld [vmem:[#allocation2 + $0x428] sm:$0xff]  ;;  %v198_v9 = vld [vmem:[#allocation2 + $0x438] sm:$0xff] }
  0x6f   :  { %427 = vmatprep.subr.mxu0 %v116_v10  ;;  %498 = vmatprep.subr.mxu1 %v118_v11  ;;  %v195_v10 = vld [vmem:[#allocation2 + $0x420] sm:$0xff]  ;;  %v197_v11 = vld [vmem:[#allocation2 + $0x430] sm:$0xff] }
  0x70   :  { %428 = vmatpush1.msra.mxu0 %v115_v12  ;;  %499 = vmatpush1.msra.mxu1 %v117_v13  ;;  %v634_v12 = vld [vmem:[#allocation4 + $0x1e8] sm:$0xff]  ;;  %v636_v13 = vld [vmem:[#allocation4 + $0x1f8] sm:$0xff] }
  0x71   :  { %429 = vmatprep.subr.mxu0 %v108_v14  ;;  %500 = vmatprep.subr.mxu1 %v110_v15  ;;  %v633_v14 = vld [vmem:[#allocation4 + $0x1e0] sm:$0xff]  ;;  %v635_v15 = vld [vmem:[#allocation4 + $0x1f0] sm:$0xff] }
  0x72   :  { %430 = vmatpush1.msra.mxu0 %v107_v16  ;;  %501 = vmatpush1.msra.mxu1 %v109_v17  ;;  %v630_v16 = vld [vmem:[#allocation4 + $0x1c8] sm:$0xff]  ;;  %v632_v17 = vld [vmem:[#allocation4 + $0x1d8] sm:$0xff] }
  0x73   :  { %431 = vmatprep.subr.mxu0 %v100_v18  ;;  %502 = vmatprep.subr.mxu1 %v102_v19  ;;  %v629_v18 = vld [vmem:[#allocation4 + $0x1c0] sm:$0xff]  ;;  %v631_v19 = vld [vmem:[#allocation4 + $0x1d0] sm:$0xff] }
  0x74   :  { %432 = vmatpush1.msra.mxu0 %v99_v20  ;;  %503 = vmatpush1.msra.mxu1 %v101_v21  ;;  %v626_v20 = vld [vmem:[#allocation4 + $0x1a8] sm:$0xff]  ;;  %v625_v21 = vld [vmem:[#allocation4 + $0x1a0] sm:$0xff] }
  0x75   :  { %433 = vmatprep.subr.mxu0 %v92_v22  ;;  %504 = vmatprep.subr.mxu1 %v94_v23  ;;  %v627_v22 = vld [vmem:[#allocation4 + $0x1b0] sm:$0xff]  ;;  %v622_v23 = vld [vmem:[#allocation4 + $0x188] sm:$0xff] }
  0x76   :  { %434 = vmatpush1.msra.mxu0 %v91_v24  ;;  %505 = vmatpush1.msra.mxu1 %v93_v25  ;;  %v621_v24 = vld [vmem:[#allocation4 + $0x180] sm:$0xff]  ;;  %v623_v25 = vld [vmem:[#allocation4 + $0x190] sm:$0xff] }
  0x77   :  { %435 = vmatprep.subr.mxu0 %v84_v26  ;;  %506 = vmatprep.subr.mxu1 %v86_v27  ;;  %v618_v26 = vld [vmem:[#allocation4 + $0x168] sm:$0xff]  ;;  %v620_v27 = vld [vmem:[#allocation4 + $0x178] sm:$0xff] }
  0x78   :  { %436 = vmatpush1.msra.mxu0 %v83_v28  ;;  %507 = vmatpush1.msra.mxu1 %v85_v29  ;;  %v617_v28 = vld [vmem:[#allocation4 + $0x160] sm:$0xff]  ;;  %v619_v29 = vld [vmem:[#allocation4 + $0x170] sm:$0xff] }
  0x79   :  { %437 = vmatprep.subr.mxu0 %v76_v30  ;;  %508 = vmatprep.subr.mxu1 %v78_v31  ;;  %v614_v30 = vld [vmem:[#allocation4 + $0x148] sm:$0xff]  ;;  %v616_v31 = vld [vmem:[#allocation4 + $0x158] sm:$0xff] }
  0x7a   :  { %438 = vmatpush1.msra.mxu0 %v75_v32  ;;  %509 = vmatpush1.msra.mxu1 %v77_v33  ;;  %v613_v32 = vld [vmem:[#allocation4 + $0x140] sm:$0xff]  ;;  %v615_v33 = vld [vmem:[#allocation4 + $0x150] sm:$0xff] }
  0x7b   :  { %439 = vmatprep.subr.mxu0 %v68_v34  ;;  %510 = vmatprep.subr.mxu1 %v70_v36  ;;  %v610_v34 = vld [vmem:[#allocation4 + $0x128] sm:$0xff]  ;;  %v612_v36 = vld [vmem:[#allocation4 + $0x138] sm:$0xff] }
  0x7c   :  { %440 = vmatpush1.msra.mxu0 %v67_v38  ;;  %511 = vmatpush1.msra.mxu1 %v69_v39  ;;  %v609_v38 = vld [vmem:[#allocation4 + $0x120] sm:$0xff]  ;;  %v611_v39 = vld [vmem:[#allocation4 + $0x130] sm:$0xff] }
  0x7d   :  { %455 = vmatprep.subr.mxu0 %v260_v40  ;;  %526 = vmatprep.subr.mxu1 %v262_v41  ;;  %v606_v40 = vld [vmem:[#allocation4 + $0x108] sm:$0xff]  ;;  %v608_v41 = vld [vmem:[#allocation4 + $0x118] sm:$0xff] }
  0x7e   :  { %456 = vmatpush2.msra.mxu0 %v259_v42  ;;  %527 = vmatpush2.msra.mxu1 %v261_v43  ;;  %v605_v42 = vld [vmem:[#allocation4 + $0x100] sm:$0xff]  ;;  %v607_v43 = vld [vmem:[#allocation4 + $0x110] sm:$0xff] }
  0x7f   :  { %457 = vmatprep.subr.mxu0 %v252_v44  ;;  %528 = vmatprep.subr.mxu1 %v254_v45  ;;  %v602_v44 = vld [vmem:[#allocation4 + $0xe8] sm:$0xff]  ;;  %v604_v45 = vld [vmem:[#allocation4 + $0xf8] sm:$0xff] }
  0x80   :  { %458 = vmatpush2.msra.mxu0 %v251_v46  ;;  %529 = vmatpush2.msra.mxu1 %v253_v47  ;;  %v601_v46 = vld [vmem:[#allocation4 + $0xe0] sm:$0xff]  ;;  %v603_v47 = vld [vmem:[#allocation4 + $0xf0] sm:$0xff] }
  0x81   :  { %459 = vmatprep.subr.mxu0 %v244_v48  ;;  %530 = vmatprep.subr.mxu1 %v246_v49  ;;  %v598_v48 = vld [vmem:[#allocation4 + $0xc8] sm:$0xff]  ;;  %v600_v49 = vld [vmem:[#allocation4 + $0xd8] sm:$0xff] }
  0x82   :  { %460 = vmatpush2.msra.mxu0 %v243_v50  ;;  %531 = vmatpush2.msra.mxu1 %v245_v51  ;;  %v597_v50 = vld [vmem:[#allocation4 + $0xc0] sm:$0xff]  ;;  %v599_v51 = vld [vmem:[#allocation4 + $0xd0] sm:$0xff] }
  0x83   :  { %461 = vmatprep.subr.mxu0 %v236_v52  ;;  %532 = vmatprep.subr.mxu1 %v238_v53  ;;  %v594_v52 = vld [vmem:[#allocation4 + $0xa8] sm:$0xff]  ;;  %v596_v53 = vld [vmem:[#allocation4 + $0xb8] sm:$0xff] }
  0x84   :  { %462 = vmatpush2.msra.mxu0 %v235_v54  ;;  %533 = vmatpush2.msra.mxu1 %v237_v55  ;;  %v593_v54 = vld [vmem:[#allocation4 + $0xa0] sm:$0xff]  ;;  %v595_v55 = vld [vmem:[#allocation4 + $0xb0] sm:$0xff] }
  0x85   :  { %463 = vmatprep.subr.mxu0 %v228_v56  ;;  %534 = vmatprep.subr.mxu1 %v230_v57  ;;  %v590_v56 = vld [vmem:[#allocation4 + $0x88] sm:$0xff]  ;;  %v592_v57 = vld [vmem:[#allocation4 + $0x98] sm:$0xff] }
  0x86   :  { %464 = vmatpush2.msra.mxu0 %v227_v58  ;;  %535 = vmatpush2.msra.mxu1 %v229_v59  ;;  %v589_v58 = vld [vmem:[#allocation4 + $0x80] sm:$0xff]  ;;  %v591_v59 = vld [vmem:[#allocation4 + $0x90] sm:$0xff] }
  0x87   :  { %465 = vmatprep.subr.mxu0 %v220_v60  ;;  %536 = vmatprep.subr.mxu1 %v222_v61  ;;  %v586_v60 = vld [vmem:[#allocation4 + $0x68] sm:$0xff]  ;;  %v588_v61 = vld [vmem:[#allocation4 + $0x78] sm:$0xff] }
  0x88   :  { %466 = vmatpush2.msra.mxu0 %v219_v62  ;;  %537 = vmatpush2.msra.mxu1 %v221_v63  ;;  %v585_v62 = vld [vmem:[#allocation4 + $0x60] sm:$0xff]  ;;  %v587_v63 = vld [vmem:[#allocation4 + $0x70] sm:$0xff] }
  0x89   :  { %467 = vmatprep.subr.mxu0 %v212_v0  ;;  %538 = vmatprep.subr.mxu1 %v214_v1  ;;  %v582_v0 = vld [vmem:[#allocation4 + $0x48] sm:$0xff]  ;;  %v584_v1 = vld [vmem:[#allocation4 + $0x58] sm:$0xff] }
  0x8a   :  { %468 = vmatpush2.msra.mxu0 %v211_v2  ;;  %539 = vmatpush2.msra.mxu1 %v213_v3  ;;  %v581_v2 = vld [vmem:[#allocation4 + $0x40] sm:$0xff]  ;;  %v583_v3 = vld [vmem:[#allocation4 + $0x50] sm:$0xff] }
  0x8b   :  { %469 = vmatprep.subr.mxu0 %v204_v4  ;;  %540 = vmatprep.subr.mxu1 %v206_v5  ;;  %v578_v4 = vld [vmem:[#allocation4 + $0x28] sm:$0xff]  ;;  %v580_v5 = vld [vmem:[#allocation4 + $0x38] sm:$0xff] }
  0x8c   :  { %470 = vmatpush2.msra.mxu0 %v203_v6  ;;  %541 = vmatpush2.msra.mxu1 %v205_v7  ;;  %v577_v6 = vld [vmem:[#allocation4 + $0x20] sm:$0xff]  ;;  %v579_v7 = vld [vmem:[#allocation4 + $0x30] sm:$0xff] }
  0x8d   :  { %471 = vmatprep.subr.mxu0 %v196_v8  ;;  %542 = vmatprep.subr.mxu1 %v198_v9  ;;  %v574_v8 = vld [vmem:[#allocation4 + $0x8] sm:$0xff]  ;;  %v576_v9 = vld [vmem:[#allocation4 + $0x18] sm:$0xff] }
  0x8e   :  { %472 = vmatpush2.msra.mxu0 %v195_v10  ;;  %1085 = vmatprep.mubr.msk.f32.mxu0 %vm263_vm0, %v1282_v35  ;;  %v573_v10 = vld [vmem:[#allocation4] sm:$0xff] }
  0x8f   :  { %543 = vmatpush2.msra.mxu1 %v197_v11  ;;  %1086 = vmatprep.mubr.msk.f32.mxu1 %vm263_vm0, %v1282_v35  ;;  %v628_v35 = vld [vmem:[#allocation4 + $0x1b8] sm:$0xff]  ;;  %v575_v11 = vld [vmem:[#allocation4 + $0x10] sm:$0xff] }
  0x90   :  { %474 = vmatmul.mubr.f32.vlgmr.msra.gmra.mxu0 %v1287_v37  ;;  %545 = vmatmul.mubr.f32.vlgmr.msra.gmra.mxu1 %v1287_v37  ;;  %v624_v37 = vld [vmem:[#allocation4 + $0x198] sm:$0xff] }
  0x91   :  { %723 = vmatprep.subr.mxu0 %v634_v12  ;;  %794 = vmatprep.subr.mxu1 %v636_v13  ;;  %v698_v12 = vld [vmem:[#allocation4 + $0x3e8] sm:$0xff]  ;;  %v700_v13 = vld [vmem:[#allocation4 + $0x3f8] sm:$0xff] }
  0x92   :  { %724 = vmatpush1.msra.mxu0 %v633_v14  ;;  %795 = vmatpush1.msra.mxu1 %v635_v15  ;;  %v697_v14 = vld [vmem:[#allocation4 + $0x3e0] sm:$0xff]  ;;  %v699_v15 = vld [vmem:[#allocation4 + $0x3f0] sm:$0xff] }
  0x93   :  { %725 = vmatprep.subr.mxu0 %v630_v16  ;;  %796 = vmatprep.subr.mxu1 %v632_v17  ;;  %v694_v16 = vld [vmem:[#allocation4 + $0x3c8] sm:$0xff]  ;;  %v696_v17 = vld [vmem:[#allocation4 + $0x3d8] sm:$0xff] }
  0x94   :  { %726 = vmatpush1.msra.mxu0 %v629_v18  ;;  %797 = vmatpush1.msra.mxu1 %v631_v19  ;;  %v693_v18 = vld [vmem:[#allocation4 + $0x3c0] sm:$0xff]  ;;  %v695_v19 = vld [vmem:[#allocation4 + $0x3d0] sm:$0xff] }
  0x95   :  { %727 = vmatprep.subr.mxu0 %v626_v20  ;;  %798 = vmatprep.subr.mxu1 %v628_v35  ;;  %v690_v20 = vld [vmem:[#allocation4 + $0x3a8] sm:$0xff]  ;;  %v692_v35 = vld [vmem:[#allocation4 + $0x3b8] sm:$0xff] }
  0x96   :  { %728 = vmatpush1.msra.mxu0 %v625_v21  ;;  %799 = vmatpush1.msra.mxu1 %v627_v22  ;;  %v689_v21 = vld [vmem:[#allocation4 + $0x3a0] sm:$0xff]  ;;  %v691_v22 = vld [vmem:[#allocation4 + $0x3b0] sm:$0xff] }
  0x97   :  { %729 = vmatprep.subr.mxu0 %v622_v23  ;;  %800 = vmatprep.subr.mxu1 %v624_v37  ;;  %v686_v23 = vld [vmem:[#allocation4 + $0x388] sm:$0xff]  ;;  %v688_v37 = vld [vmem:[#allocation4 + $0x398] sm:$0xff] }
  0x98   :  { %730 = vmatpush1.msra.mxu0 %v621_v24  ;;  %801 = vmatpush1.msra.mxu1 %v623_v25  ;;  %v685_v24 = vld [vmem:[#allocation4 + $0x380] sm:$0xff]  ;;  %v687_v25 = vld [vmem:[#allocation4 + $0x390] sm:$0xff] }
  0x99   :  { %731 = vmatprep.subr.mxu0 %v618_v26  ;;  %802 = vmatprep.subr.mxu1 %v620_v27  ;;  %v682_v26 = vld [vmem:[#allocation4 + $0x368] sm:$0xff]  ;;  %v684_v27 = vld [vmem:[#allocation4 + $0x378] sm:$0xff] }
  0x9a   :  { %732 = vmatpush1.msra.mxu0 %v617_v28  ;;  %803 = vmatpush1.msra.mxu1 %v619_v29  ;;  %v681_v28 = vld [vmem:[#allocation4 + $0x360] sm:$0xff]  ;;  %v683_v29 = vld [vmem:[#allocation4 + $0x370] sm:$0xff] }
  0x9b   :  { %733 = vmatprep.subr.mxu0 %v614_v30  ;;  %804 = vmatprep.subr.mxu1 %v616_v31  ;;  %v678_v30 = vld [vmem:[#allocation4 + $0x348] sm:$0xff]  ;;  %v680_v31 = vld [vmem:[#allocation4 + $0x358] sm:$0xff] }
  0x9c   :  { %734 = vmatpush1.msra.mxu0 %v613_v32  ;;  %805 = vmatpush1.msra.mxu1 %v615_v33  ;;  %v677_v32 = vld [vmem:[#allocation4 + $0x340] sm:$0xff]  ;;  %v679_v33 = vld [vmem:[#allocation4 + $0x350] sm:$0xff] }
  0x9d   :  { %735 = vmatprep.subr.mxu0 %v610_v34  ;;  %806 = vmatprep.subr.mxu1 %v612_v36  ;;  %v674_v34 = vld [vmem:[#allocation4 + $0x328] sm:$0xff]  ;;  %v676_v36 = vld [vmem:[#allocation4 + $0x338] sm:$0xff] }
  0x9e   :  { %736 = vmatpush1.msra.mxu0 %v609_v38  ;;  %807 = vmatpush1.msra.mxu1 %v611_v39  ;;  %v673_v38 = vld [vmem:[#allocation4 + $0x320] sm:$0xff]  ;;  %v675_v39 = vld [vmem:[#allocation4 + $0x330] sm:$0xff] }
  0x9f   :  { %737 = vmatprep.subr.mxu0 %v606_v40  ;;  %808 = vmatprep.subr.mxu1 %v608_v41  ;;  %v670_v40 = vld [vmem:[#allocation4 + $0x308] sm:$0xff]  ;;  %v672_v41 = vld [vmem:[#allocation4 + $0x318] sm:$0xff] }
  0xa0   :  { %738 = vmatpush1.msra.mxu0 %v605_v42  ;;  %809 = vmatpush1.msra.mxu1 %v607_v43  ;;  %v669_v42 = vld [vmem:[#allocation4 + $0x300] sm:$0xff]  ;;  %v671_v43 = vld [vmem:[#allocation4 + $0x310] sm:$0xff] }
  0xa1   :  { %739 = vmatprep.subr.mxu0 %v602_v44  ;;  %810 = vmatprep.subr.mxu1 %v604_v45  ;;  %v666_v44 = vld [vmem:[#allocation4 + $0x2e8] sm:$0xff]  ;;  %v668_v45 = vld [vmem:[#allocation4 + $0x2f8] sm:$0xff] }
  0xa2   :  { %740 = vmatpush1.msra.mxu0 %v601_v46  ;;  %811 = vmatpush1.msra.mxu1 %v603_v47  ;;  %v665_v46 = vld [vmem:[#allocation4 + $0x2e0] sm:$0xff]  ;;  %v667_v47 = vld [vmem:[#allocation4 + $0x2f0] sm:$0xff] }
  0xa3   :  { %741 = vmatprep.subr.mxu0 %v598_v48  ;;  %812 = vmatprep.subr.mxu1 %v600_v49  ;;  %v662_v48 = vld [vmem:[#allocation4 + $0x2c8] sm:$0xff]  ;;  %v664_v49 = vld [vmem:[#allocation4 + $0x2d8] sm:$0xff] }
  0xa4   :  { %742 = vmatpush1.msra.mxu0 %v597_v50  ;;  %813 = vmatpush1.msra.mxu1 %v599_v51  ;;  %v661_v50 = vld [vmem:[#allocation4 + $0x2c0] sm:$0xff]  ;;  %v663_v51 = vld [vmem:[#allocation4 + $0x2d0] sm:$0xff] }
  0xa5   :  { %743 = vmatprep.subr.mxu0 %v594_v52  ;;  %814 = vmatprep.subr.mxu1 %v596_v53  ;;  %v658_v52 = vld [vmem:[#allocation4 + $0x2a8] sm:$0xff]  ;;  %v660_v53 = vld [vmem:[#allocation4 + $0x2b8] sm:$0xff] }
  0xa6   :  { %744 = vmatpush1.msra.mxu0 %v593_v54  ;;  %815 = vmatpush1.msra.mxu1 %v595_v55  ;;  %v657_v54 = vld [vmem:[#allocation4 + $0x2a0] sm:$0xff]  ;;  %v659_v55 = vld [vmem:[#allocation4 + $0x2b0] sm:$0xff] }
  0xa7   :  { %745 = vmatprep.subr.mxu0 %v590_v56  ;;  %816 = vmatprep.subr.mxu1 %v592_v57  ;;  %v654_v56 = vld [vmem:[#allocation4 + $0x288] sm:$0xff]  ;;  %v656_v57 = vld [vmem:[#allocation4 + $0x298] sm:$0xff] }
  0xa8   :  { %746 = vmatpush1.msra.mxu0 %v589_v58  ;;  %817 = vmatpush1.msra.mxu1 %v591_v59  ;;  %v653_v58 = vld [vmem:[#allocation4 + $0x280] sm:$0xff]  ;;  %v655_v59 = vld [vmem:[#allocation4 + $0x290] sm:$0xff] }
  0xa9   :  { %747 = vmatprep.subr.mxu0 %v586_v60  ;;  %818 = vmatprep.subr.mxu1 %v588_v61  ;;  %v650_v60 = vld [vmem:[#allocation4 + $0x268] sm:$0xff]  ;;  %v652_v61 = vld [vmem:[#allocation4 + $0x278] sm:$0xff] }
  0xaa   :  { %748 = vmatpush1.msra.mxu0 %v585_v62  ;;  %819 = vmatpush1.msra.mxu1 %v587_v63  ;;  %v649_v62 = vld [vmem:[#allocation4 + $0x260] sm:$0xff]  ;;  %v651_v63 = vld [vmem:[#allocation4 + $0x270] sm:$0xff] }
  0xab   :  { %749 = vmatprep.subr.mxu0 %v582_v0  ;;  %820 = vmatprep.subr.mxu1 %v584_v1  ;;  %v646_v0 = vld [vmem:[#allocation4 + $0x248] sm:$0xff]  ;;  %v648_v1 = vld [vmem:[#allocation4 + $0x258] sm:$0xff] }
  0xac   :  { %750 = vmatpush1.msra.mxu0 %v581_v2  ;;  %821 = vmatpush1.msra.mxu1 %v583_v3  ;;  %v645_v2 = vld [vmem:[#allocation4 + $0x240] sm:$0xff]  ;;  %v647_v3 = vld [vmem:[#allocation4 + $0x250] sm:$0xff] }
  0xad   :  { %751 = vmatprep.subr.mxu0 %v578_v4  ;;  %822 = vmatprep.subr.mxu1 %v580_v5  ;;  %v642_v4 = vld [vmem:[#allocation4 + $0x228] sm:$0xff]  ;;  %v644_v5 = vld [vmem:[#allocation4 + $0x238] sm:$0xff] }
  0xae   :  { %752 = vmatpush1.msra.mxu0 %v577_v6  ;;  %823 = vmatpush1.msra.mxu1 %v579_v7  ;;  %v641_v6 = vld [vmem:[#allocation4 + $0x220] sm:$0xff]  ;;  %v643_v7 = vld [vmem:[#allocation4 + $0x230] sm:$0xff] }
  0xaf   :  { %753 = vmatprep.subr.mxu0 %v574_v8  ;;  %824 = vmatprep.subr.mxu1 %v576_v9  ;;  %v638_v8 = vld [vmem:[#allocation4 + $0x208] sm:$0xff]  ;;  %v640_v9 = vld [vmem:[#allocation4 + $0x218] sm:$0xff] }
  0xb0   :  { %754 = vmatpush1.msra.mxu0 %v573_v10  ;;  %825 = vmatpush1.msra.mxu1 %v575_v11  ;;  %v637_v10 = vld [vmem:[#allocation4 + $0x200] sm:$0xff]  ;;  %v639_v11 = vld [vmem:[#allocation4 + $0x210] sm:$0xff] }
  0xb1   :  { %755 = vmatprep.subr.mxu0 %v698_v12  ;;  %826 = vmatprep.subr.mxu1 %v700_v13  ;;  %v896_v12 = vld [vmem:[#allocation6 + $0xf8] sm:$0xff] }
  0xb2   :  { %756 = vmatpush2.msra.mxu0 %v697_v14  ;;  %827 = vmatpush2.msra.mxu1 %v699_v15  ;;  %v928_v13 = vld [vmem:[#allocation6 + $0x1f8] sm:$0xff]  ;;  %v559_v14 = vlaneseq }
  0xb3   :  { %757 = vmatprep.subr.mxu0 %v694_v16  ;;  %828 = vmatprep.subr.mxu1 %v696_v17 }
  0xb4   :  { %758 = vmatpush2.msra.mxu0 %v693_v18  ;;  %829 = vmatpush2.msra.mxu1 %v695_v19  ;;  %v1301_v17 = vshrl.u32 %v559_v14, 7  ;;  %v918_v14 = vld [vmem:[#allocation6 + $0x1a8] sm:$0xff] }
  0xb5   :  { %759 = vmatprep.subr.mxu0 %v690_v20  ;;  %830 = vmatprep.subr.mxu1 %v692_v35  ;;  %v557_v35 = vld [vmem:[%s1329_s2] sm:$0x3] }
  0xb6   :  { %760 = vmatpush2.msra.mxu0 %v689_v21  ;;  %831 = vmatpush2.msra.mxu1 %v691_v22  ;;  %v561_v20 = vsub.s32 0, %v1301_v17  ;;  %v565_v21 = vsub.s32 1, %v1301_v17 }
  0xb7   :  { %761 = vmatprep.subr.mxu0 %v686_v23  ;;  %832 = vmatprep.subr.mxu1 %v688_v37 }
  0xb8   :  { %762 = vmatpush2.msra.mxu0 %v685_v24  ;;  %833 = vmatpush2.msra.mxu1 %v687_v25  ;;  %v562_v25 = vrot.slane %v557_v35, %v561_v20 }
  0xb9   :  { %763 = vmatprep.subr.mxu0 %v682_v26  ;;  %834 = vmatprep.subr.mxu1 %v684_v27 }
  0xba   :  { %764 = vmatpush2.msra.mxu0 %v681_v28  ;;  %835 = vmatpush2.msra.mxu1 %v683_v29 }
  0xbb   :  { %765 = vmatprep.subr.mxu0 %v678_v30  ;;  %836 = vmatprep.subr.mxu1 %v680_v31  ;;  %v566_v31 = vrot.slane %v557_v35, %v565_v21  ;;  %v869_v35 = vld [vmem:[#allocation6 + $0x20] sm:$0xff] }
  0xbc   :  { %766 = vmatpush2.msra.mxu0 %v677_v32  ;;  %837 = vmatpush2.msra.mxu1 %v679_v33 }
  0xbd   :  { %767 = vmatprep.subr.mxu0 %v674_v34  ;;  %838 = vmatprep.subr.mxu1 %v676_v36 }
  0xbe   :  { %768 = vmatpush2.msra.mxu0 %v673_v38  ;;  %839 = vmatpush2.msra.mxu1 %v675_v39  ;;  %v880_v39 = vld [vmem:[#allocation6 + $0x78] sm:$0xff] }
  0xbf   :  { %769 = vmatprep.subr.mxu0 %v670_v40  ;;  %840 = vmatprep.subr.mxu1 %v672_v41  ;;  %v912_v40 = vld [vmem:[#allocation6 + $0x178] sm:$0xff]  ;;  %v895_v41 = vld [vmem:[#allocation6 + $0xf0] sm:$0xff] }
  0xc0   :  { %770 = vmatpush2.msra.mxu0 %v669_v42  ;;  %841 = vmatpush2.msra.mxu1 %v671_v43  ;;  %v927_v42 = vld [vmem:[#allocation6 + $0x1f0] sm:$0xff] }
  0xc1   :  { %771 = vmatprep.subr.mxu0 %v666_v44  ;;  %842 = vmatprep.subr.mxu1 %v668_v45  ;;  %v879_v43 = vld [vmem:[#allocation6 + $0x70] sm:$0xff]  ;;  %v894_v45 = vld [vmem:[#allocation6 + $0xe8] sm:$0xff] }
  0xc2   :  { %772 = vmatpush2.msra.mxu0 %v665_v46  ;;  %843 = vmatpush2.msra.mxu1 %v667_v47  ;;  %v911_v44 = vld [vmem:[#allocation6 + $0x170] sm:$0xff]  ;;  %v926_v46 = vld [vmem:[#allocation6 + $0x1e8] sm:$0xff] }
  0xc3   :  { %773 = vmatprep.subr.mxu0 %v662_v48  ;;  %844 = vmatprep.subr.mxu1 %v664_v49  ;;  %v878_v47 = vld [vmem:[#allocation6 + $0x68] sm:$0xff]  ;;  %v893_v49 = vld [vmem:[#allocation6 + $0xe0] sm:$0xff] }
  0xc4   :  { %774 = vmatpush2.msra.mxu0 %v661_v50  ;;  %845 = vmatpush2.msra.mxu1 %v663_v51  ;;  %v910_v48 = vld [vmem:[#allocation6 + $0x168] sm:$0xff]  ;;  %v925_v50 = vld [vmem:[#allocation6 + $0x1e0] sm:$0xff] }
  0xc5   :  { %775 = vmatprep.subr.mxu0 %v658_v52  ;;  %846 = vmatprep.subr.mxu1 %v660_v53  ;;  %v877_v51 = vld [vmem:[#allocation6 + $0x60] sm:$0xff]  ;;  %v892_v53 = vld [vmem:[#allocation6 + $0xd8] sm:$0xff] }
  0xc6   :  { %776 = vmatpush2.msra.mxu0 %v657_v54  ;;  %847 = vmatpush2.msra.mxu1 %v659_v55  ;;  %v909_v52 = vld [vmem:[#allocation6 + $0x160] sm:$0xff]  ;;  %v924_v54 = vld [vmem:[#allocation6 + $0x1d8] sm:$0xff] }
  0xc7   :  { %777 = vmatprep.subr.mxu0 %v654_v56  ;;  %848 = vmatprep.subr.mxu1 %v656_v57  ;;  %v876_v55 = vld [vmem:[#allocation6 + $0x58] sm:$0xff]  ;;  %v891_v57 = vld [vmem:[#allocation6 + $0xd0] sm:$0xff] }
  0xc8   :  { %778 = vmatpush2.msra.mxu0 %v653_v58  ;;  %849 = vmatpush2.msra.mxu1 %v655_v59  ;;  %v908_v56 = vld [vmem:[#allocation6 + $0x158] sm:$0xff]  ;;  %v923_v58 = vld [vmem:[#allocation6 + $0x1d0] sm:$0xff] }
  0xc9   :  { %779 = vmatprep.subr.mxu0 %v650_v60  ;;  %850 = vmatprep.subr.mxu1 %v652_v61  ;;  %v875_v59 = vld [vmem:[#allocation6 + $0x50] sm:$0xff]  ;;  %v890_v61 = vld [vmem:[#allocation6 + $0xc8] sm:$0xff] }
  0xca   :  { %780 = vmatpush2.msra.mxu0 %v649_v62  ;;  %851 = vmatpush2.msra.mxu1 %v651_v63  ;;  %v907_v60 = vld [vmem:[#allocation6 + $0x150] sm:$0xff]  ;;  %v922_v62 = vld [vmem:[#allocation6 + $0x1c8] sm:$0xff] }
  0xcb   :  { %781 = vmatprep.subr.mxu0 %v646_v0  ;;  %852 = vmatprep.subr.mxu1 %v648_v1  ;;  %v874_v63 = vld [vmem:[#allocation6 + $0x48] sm:$0xff]  ;;  %v889_v1 = vld [vmem:[#allocation6 + $0xc0] sm:$0xff] }
  0xcc   :  { %782 = vmatpush2.msra.mxu0 %v645_v2  ;;  %853 = vmatpush2.msra.mxu1 %v647_v3  ;;  %v906_v0 = vld [vmem:[#allocation6 + $0x148] sm:$0xff]  ;;  %v921_v2 = vld [vmem:[#allocation6 + $0x1c0] sm:$0xff] }
  0xcd   :  { %783 = vmatprep.subr.mxu0 %v642_v4  ;;  %854 = vmatprep.subr.mxu1 %v644_v5  ;;  %v873_v3 = vld [vmem:[#allocation6 + $0x40] sm:$0xff]  ;;  %v888_v5 = vld [vmem:[#allocation6 + $0xb8] sm:$0xff] }
  0xce   :  { %784 = vmatpush2.msra.mxu0 %v641_v6  ;;  %855 = vmatpush2.msra.mxu1 %v643_v7  ;;  %v905_v4 = vld [vmem:[#allocation6 + $0x140] sm:$0xff]  ;;  %v920_v6 = vld [vmem:[#allocation6 + $0x1b8] sm:$0xff] }
  0xcf   :  { %785 = vmatprep.subr.mxu0 %v638_v8  ;;  %856 = vmatprep.subr.mxu1 %v640_v9  ;;  %v872_v7 = vld [vmem:[#allocation6 + $0x38] sm:$0xff]  ;;  %v887_v9 = vld [vmem:[#allocation6 + $0xb0] sm:$0xff] }
  0xd0   :  { %786 = vmatpush2.msra.mxu0 %v637_v10  ;;  %857 = vmatpush2.msra.mxu1 %v639_v11  ;;  %v904_v8 = vld [vmem:[#allocation6 + $0x138] sm:$0xff]  ;;  %v919_v10 = vld [vmem:[#allocation6 + $0x1b0] sm:$0xff] }
  0xd1   :  { %1088 = vmatprep.subr.mxu0 %v896_v12  ;;  %1123 = vmatprep.subr.mxu1 %v928_v13  ;;  %v871_v11 = vld [vmem:[#allocation6 + $0x30] sm:$0xff]  ;;  %v886_v13 = vld [vmem:[#allocation6 + $0xa8] sm:$0xff] }
  0xd2   :  { %v903_v12 = vld [vmem:[#allocation6 + $0x130] sm:$0xff] }
 0x11c   :  { %v333_v15 = vpop.f32.mrf.mxu0  ;;  %v404_v16 = vpop.f32.mrf.mxu1 }
 0x11d   :  { %v551_v37 = vmax.f32 %v333_v15, %v404_v16  ;;  %v870_v15 = vld [vmem:[#allocation6 + $0x28] sm:$0xff] }
 0x11e   :  { %v335_v18 = vpop.f32.mrf.mxu0  ;;  %v406_v19 = vpop.f32.mrf.mxu1  ;;  %v902_v16 = vld [vmem:[#allocation6 + $0x128] sm:$0xff] }
 0x11f   :  { %v552_v28 = vmax.f32 %v335_v18, %v406_v19  ;;  %v885_v18 = vld [vmem:[#allocation6 + $0xa0] sm:$0xff] }
 0x120   :  { %v917_v19 = vld [vmem:[#allocation6 + $0x1a0] sm:$0xff] }
 0x150   :  { %v475_v22 = vpop.f32.mrf.mxu0  ;;  %v546_v23 = vpop.f32.mrf.mxu1 }
 0x151   :  { %v553_v24 = vmax.f32 %v475_v22, %v546_v23  ;;  %v901_v22 = vld [vmem:[#allocation6 + $0x120] sm:$0xff]  ;;  %v884_v23 = vld [vmem:[#allocation6 + $0x98] sm:$0xff] }
 0x152   :  { %v477_v26 = vpop.f32.mrf.mxu0  ;;  %v548_v27 = vpop.f32.mrf.mxu1 }
 0x153   :  { %v555_v29 = vmax.f32 %v551_v37, %v553_v24  ;;  %v554_v30 = vmax.f32 %v477_v26, %v548_v27  ;;  %v916_v37 = vld [vmem:[#allocation6 + $0x198] sm:$0xff]  ;;  %v883_v26 = vld [vmem:[#allocation6 + $0x90] sm:$0xff] }
 0x154   :  { %v868_v24 = vld [vmem:[#allocation6 + $0x18] sm:$0xff]  ;;  %v915_v27 = vld [vmem:[#allocation6 + $0x190] sm:$0xff] }
 0x155   :  { %v556_v32 = vmax.f32 %v552_v28, %v554_v30  ;;  %v569_v33 = vadd.f32 %v562_v25, %v555_v29  ;;  %v900_v25 = vld [vmem:[#allocation6 + $0x118] sm:$0xff]  ;;  %v867_v28 = vld [vmem:[#allocation6 + $0x10] sm:$0xff]  ;;  %v882_v30 = vld [vmem:[#allocation6 + $0x88] sm:$0xff] }
 0x156   :  { %v899_v29 = vld [vmem:[#allocation6 + $0x110] sm:$0xff] }
 0x157   :  { %v570_v34 = vadd.f32 %v566_v31, %v556_v32  ;;  %v571_v38 = vmax.f32 %v569_v33, 0.0  ;;  %v914_v31 = vld [vmem:[#allocation6 + $0x188] sm:$0xff] }
 0x158   :  { %v866_v32 = vld [vmem:[#allocation6 + $0x8] sm:$0xff] }
 0x159   :  { %v572_v36 = vmax.f32 %v570_v34, 0.0  ;;  %v898_v33 = vld [vmem:[#allocation6 + $0x108] sm:$0xff]  ;;  %v881_v34 = vld [vmem:[#allocation6 + $0x80] sm:$0xff] }
 0x15b   :  { %787 = vmatprep.mubr.f32.mxu0 %v572_v36  ;;  %858 = vmatprep.mubr.f32.mxu1 %v572_v36  ;;  %v913_v36 = vld [vmem:[#allocation6 + $0x180] sm:$0xff] }
 0x15c   :  { %788 = vmatmul.mubr.f32.vlgmr.msra.gmra.mxu0 %v571_v38  ;;  %859 = vmatmul.mubr.f32.vlgmr.msra.gmra.mxu1 %v571_v38  ;;  %v865_v38 = vld [vmem:[#allocation6] sm:$0xff] }
 0x15d   :  { %1089 = vmatpush3.msra.mxu0 %v880_v39  ;;  %1124 = vmatpush3.msra.mxu1 %v912_v40  ;;  %v897_v39 = vld [vmem:[#allocation6 + $0x100] sm:$0xff]  ;;  %v717_v40 = vsub.s32 3, %v1301_v17 }
 0x15e   :  { %1090 = vmatprep.subr.mxu0 %v895_v41  ;;  %1125 = vmatprep.subr.mxu1 %v927_v42  ;;  %v713_v41 = vsub.s32 2, %v1301_v17  ;;  %v701_v42 = vld [vmem:[%s1329_s2 + $0x2] sm:$0xf]  ;;  %v1087_v17 = vld [vmem:[%s1329_s2 + $0x6] ss:$0 sm:$0xff] }
 0x15f   :  { %1091 = vmatpush3.msra.mxu0 %v879_v43  ;;  %1126 = vmatpush3.msra.mxu1 %v911_v44  ;;  %v710_v43 = vrot.slane %v701_v42, %v565_v21  ;;  %v718_v44 = vrot.slane %v701_v42, %v717_v40 }
 0x160   :  { %1092 = vmatprep.subr.mxu0 %v894_v45  ;;  %1127 = vmatprep.subr.mxu1 %v926_v46  ;;  %v706_v45 = vrot.slane %v701_v42, %v561_v20 }
 0x161   :  { %1093 = vmatpush3.msra.mxu0 %v878_v47  ;;  %1128 = vmatpush3.msra.mxu1 %v910_v48  ;;  %v714_v47 = vrot.slane %v701_v42, %v713_v41 }
 0x162   :  { %1094 = vmatprep.subr.mxu0 %v893_v49  ;;  %1129 = vmatprep.subr.mxu1 %v925_v50 }
 0x163   :  { %1095 = vmatpush3.msra.mxu0 %v877_v51  ;;  %1130 = vmatpush3.msra.mxu1 %v909_v52 }
 0x164   :  { %1096 = vmatprep.subr.mxu0 %v892_v53  ;;  %1131 = vmatprep.subr.mxu1 %v924_v54 }
 0x165   :  { %1097 = vmatpush3.msra.mxu0 %v876_v55  ;;  %1132 = vmatpush3.msra.mxu1 %v908_v56 }
 0x166   :  { %1098 = vmatprep.subr.mxu0 %v891_v57  ;;  %1133 = vmatprep.subr.mxu1 %v923_v58 }
 0x167   :  { %1099 = vmatpush3.msra.mxu0 %v875_v59  ;;  %1134 = vmatpush3.msra.mxu1 %v907_v60 }
 0x168   :  { %1100 = vmatprep.subr.mxu0 %v890_v61  ;;  %1135 = vmatprep.subr.mxu1 %v922_v62 }
 0x169   :  { %1101 = vmatpush3.msra.mxu0 %v874_v63  ;;  %1136 = vmatpush3.msra.mxu1 %v906_v0 }
 0x16a   :  { %1102 = vmatprep.subr.mxu0 %v889_v1  ;;  %1137 = vmatprep.subr.mxu1 %v921_v2 }
 0x16b   :  { %1103 = vmatpush3.msra.mxu0 %v873_v3  ;;  %1138 = vmatpush3.msra.mxu1 %v905_v4 }
 0x16c   :  { %1104 = vmatprep.subr.mxu0 %v888_v5  ;;  %1139 = vmatprep.subr.mxu1 %v920_v6 }
 0x16d   :  { %1105 = vmatpush3.msra.mxu0 %v872_v7  ;;  %1140 = vmatpush3.msra.mxu1 %v904_v8 }
 0x16e   :  { %1106 = vmatprep.subr.mxu0 %v887_v9  ;;  %1141 = vmatprep.subr.mxu1 %v919_v10 }
 0x16f   :  { %1107 = vmatpush3.msra.mxu0 %v871_v11  ;;  %1142 = vmatpush3.msra.mxu1 %v903_v12 }
 0x170   :  { %1108 = vmatprep.subr.mxu0 %v886_v13  ;;  %1143 = vmatprep.subr.mxu1 %v918_v14 }
 0x171   :  { %1109 = vmatpush3.msra.mxu0 %v870_v15  ;;  %1144 = vmatpush3.msra.mxu1 %v902_v16 }
 0x172   :  { %1110 = vmatprep.subr.mxu0 %v885_v18  ;;  %1145 = vmatprep.subr.mxu1 %v917_v19 }
 0x173   :  { %1111 = vmatpush3.msra.mxu0 %v869_v35  ;;  %1146 = vmatpush3.msra.mxu1 %v901_v22 }
 0x174   :  { %1112 = vmatprep.subr.mxu0 %v884_v23  ;;  %1147 = vmatprep.subr.mxu1 %v916_v37 }
 0x175   :  { %1113 = vmatpush3.msra.mxu0 %v868_v24  ;;  %1148 = vmatpush3.msra.mxu1 %v900_v25 }
 0x176   :  { %1114 = vmatprep.subr.mxu0 %v883_v26  ;;  %1149 = vmatprep.subr.mxu1 %v915_v27 }
 0x177   :  { %1115 = vmatpush3.msra.mxu0 %v867_v28  ;;  %1150 = vmatpush3.msra.mxu1 %v899_v29 }
 0x178   :  { %1116 = vmatprep.subr.mxu0 %v882_v30  ;;  %1151 = vmatprep.subr.mxu1 %v914_v31 }
 0x179   :  { %1117 = vmatpush3.msra.mxu0 %v866_v32  ;;  %1152 = vmatpush3.msra.mxu1 %v898_v33 }
 0x17a   :  { %1118 = vmatprep.subr.mxu0 %v881_v34  ;;  %1153 = vmatprep.subr.mxu1 %v913_v36 }
 0x17b   :  { %1119 = vmatpush3.msra.mxu0 %v865_v38  ;;  %1154 = vmatpush3.msra.mxu1 %v897_v39 }
 0x21c   :  { %v789_v46 = vpop.f32.mrf.mxu0  ;;  %v860_v48 = vpop.f32.mrf.mxu1 }
 0x21d   :  { %v790_v53 = vadd.f32 %v789_v46, %v706_v45  ;;  %v861_v54 = vadd.f32 %v860_v48, %v714_v47 }
 0x21e   :  { %v791_v49 = vpop.f32.mrf.mxu0  ;;  %v862_v50 = vpop.f32.mrf.mxu1 }
 0x21f   :  { %v792_v51 = vadd.f32 %v791_v49, %v710_v43  ;;  %v863_v52 = vadd.f32 %v862_v50, %v718_v44 }
 0x221   :  { %1000 = vmatprep.mubr.f32.mxu0 %v792_v51  ;;  %1070 = vmatprep.mubr.f32.mxu1 %v863_v52 }
 0x222   :  { %1001 = vmatmul.mubr.f32.vlgmr.msra.gmra.mxu0 %v790_v53  ;;  %1071 = vmatmul.mubr.f32.vlgmr.msra.gmra.mxu1 %v861_v54 }
 0x2e2   :  { %v1120_v55 = vpop.f32.mrf.mxu0  ;;  %v1155_v56 = vpop.f32.mrf.mxu1 }
 0x2e4   :  { %v1121_v20 = vpop.f32.mrf.mxu0  ;;  %v1156_v21 = vpop.f32.mrf.mxu1 }
 0x2e5   :  { %v1122_v57 = vadd.f32 %v1121_v20, %v1120_v55  ;;  %v1157_v59 = vadd.f32 %v1156_v21, %v1155_v56 }
 0x2e7   :  { %v1003_v58 = vadd.f32 %v1122_v57, %v1087_v17 }
 0x2e9   :  { %v1073_v60 = vadd.f32 %v1157_v59, %v1003_v58 }
 0x2eb   :  { %1076 = vst [vmem:[%s1332_s5] sm:$0xff] %v1073_v60 }
 0x2ec   :  { %1081 = vsyncpa [#allocation3], 1 }
 0x2ed   :  { %1082 = vsyncpa [#allocation5], 1 }

</bundles_post_ra>
